<compile_context>
chip_gen: v5e
topology: v5e:2x2
jax: 0.10.0
libtpu: 0.0.40
codegen_flags: <defaults>
</compile_context>

<pallas_src>
import functools

import jax
import jax.numpy as jnp
from jax.experimental import pallas as pl
from jax.experimental.pallas import tpu as pltpu


def _mf_single_block_kernel(u_ref, ut_ref, o_ref):
    # u_ref: (u, d)   ut_ref: (d, u)   o_ref: (u, u)
    # One MXU dot for the whole problem; accumulate in f32.
    o_ref[...] = jnp.dot(
        u_ref[...], ut_ref[...], preferred_element_type=jnp.float32
    ).astype(o_ref.dtype)


def _mf_tiled_kernel(u_row_ref, ut_ref, o_ref, *, tn):
    # u_row_ref: (tm, d)  rows of U for this output tile (varies with i)
    # ut_ref:    (d, u)   full pre-transposed U, resident in VMEM
    # o_ref:     (tm, tn) output tile
    j = pl.program_id(1)
    # j * tn + tn <= u by construction (grid axis 1 has extent u // tn), so
    # this dynamic slice never reads out of bounds on the resident Ut buffer.
    start = pl.multiple_of(j * tn, tn)
    cols = ut_ref[:, pl.ds(start, tn)]  # (d, tn), lane-dense along tn
    o_ref[...] = jnp.dot(
        u_row_ref[...], cols, preferred_element_type=jnp.float32
    ).astype(o_ref.dtype)


# Conservative single-block budget: inputs + output must fit comfortably in
# scoped VMEM on every generation (32 MiB default scope, 64 MiB physical v7x).
_SINGLE_BLOCK_BYTES = 8 * 1024 * 1024


def mf_forward(U, *, tm=None, tn=None):
    """Compute score = U @ U.T with a Pallas TPU kernel."""
    u, d = U.shape
    # Pre-transpose once in the wrapper: feeds the kernel a (K, N) RHS so the
    # contraction is standard and lane-dense (no in-kernel XLU transpose).
    Ut = U.T  # (d, u)

    total_bytes = (u * u + 2 * u * d) * U.dtype.itemsize
    if tm is None and tn is None and total_bytes <= _SINGLE_BLOCK_BYTES:
        # Single un-gridded invocation: whole arrays live in VMEM, zero
        # per-step pipeline overhead.  This is the path the shipped
        # (u=256, d=32) problem takes.
        return pl.pallas_call(
            _mf_single_block_kernel,
            out_shape=jax.ShapeDtypeStruct((u, u), U.dtype),
        )(U, Ut)

    # Tiled path for larger u.
    if tm is None:
        tm = 256 if u % 256 == 0 else 128
    if tn is None:
        tn = 256 if u % 256 == 0 else 128
    assert u % tm == 0 and u % tn == 0, "u must be divisible by the tile sizes"

    grid = (u // tm, u // tn)
    return pl.pallas_call(
        functools.partial(_mf_tiled_kernel, tn=tn),
        out_shape=jax.ShapeDtypeStruct((u, u), U.dtype),
        grid_spec=pltpu.PrefetchScalarGridSpec(
            num_scalar_prefetch=0,
            grid=grid,
            in_specs=[
                # Row block of U: varies with i, full d (d == full array dim,
                # so the (8,128) constraint does not apply to it).
                pl.BlockSpec((tm, d), lambda i, j: (i, 0)),
                # Full Ut, resident across the whole grid: constant index_map
                # means it is DMA'd from HBM once, not re-fetched per step.
                pl.BlockSpec((d, u), lambda i, j: (0, 0)),
            ],
            out_specs=pl.BlockSpec((tm, tn), lambda i, j: (i, j)),
        ),
        compiler_params=pltpu.CompilerParams(
            dimension_semantics=("parallel", "parallel"),
        ),
    )(U, Ut)


if __name__ == "__main__":
    # Module __init__(u, v, d): only U of shape (u, d) participates in forward.
    # TODO(synk): nn.Tanh() is constructed in the module but never applied in
    # forward(), so no activation is applied here either.
    u, v, d = 256, 256, 32  # small synthetic sizes; v is unused by forward

    key = jax.random.PRNGKey(0)
    # Deterministic init mirroring torch.rand(u, d) / 10000 (uniform [0,1)/1e4).
    U = jax.random.uniform(key, (u, d), dtype=jnp.float32) / 10000.0

    # Single-block fast path (the shipped problem size).
    score = jax.block_until_ready(mf_forward(U))
    ref = U @ U.T
    assert score.shape == (u, u)
    assert jnp.allclose(score, ref, atol=1e-6, rtol=1e-5), "mismatch vs reference"

    # Also exercise the tiled (large-u) path once to make sure it compiles/runs.
    u2 = 512
    U2 = jax.random.uniform(jax.random.PRNGKey(1), (u2, d), dtype=jnp.float32) / 10000.0
    score2 = jax.block_until_ready(mf_forward(U2, tm=256, tn=256))
    ref2 = U2 @ U2.T
    assert score2.shape == (u2, u2)
    assert jnp.allclose(score2, ref2, atol=1e-6, rtol=1e-5), "tiled mismatch vs reference"

    print("KERNEL_OK")
</pallas_src>

<mosaic_0001>
module attributes {stable_mosaic.version = 11 : i64} {
  func.func @_mf_single_block_kernel(%arg0: memref<256x32xf32, #tpu.memory_space<vmem>>, %arg1: memref<32x256xf32, #tpu.memory_space<vmem>>, %arg2: memref<256x256xf32, #tpu.memory_space<vmem>>) attributes {dimension_semantics = [], scalar_prefetch = 0 : i64, scratch_operands = 0 : i64, tpu.core_type = #tpu.core_type<tc>} {
    %c0 = arith.constant 0 : index
    %c0_0 = arith.constant 0 : index
    %0 = vector.load %arg0[%c0, %c0_0] : memref<256x32xf32, #tpu.memory_space<vmem>>, vector<256x32xf32>
    %c0_1 = arith.constant 0 : index
    %c0_2 = arith.constant 0 : index
    %1 = vector.load %arg1[%c0_1, %c0_2] : memref<32x256xf32, #tpu.memory_space<vmem>>, vector<32x256xf32>
    %cst = arith.constant dense<0.000000e+00> : vector<256x256xf32>
    %2 = tpu.matmul %0, %1, %cst {dimension_numbers = #tpu.dot_dimension_numbers<[1], [0], [0], [1], [0, 0, 1, 1], [], []>} : vector<256x32xf32>, vector<32x256xf32>, vector<256x256xf32> -> vector<256x256xf32>
    %c0_3 = arith.constant 0 : index
    %c0_4 = arith.constant 0 : index
    %3 = vector.load %arg2[%c0_3, %c0_4] : memref<256x256xf32, #tpu.memory_space<vmem>>, vector<256x256xf32>
    tpu.vector_store %arg2[%c0_3, %c0_4], %2 {strides = array<i32>} : memref<256x256xf32, #tpu.memory_space<vmem>>, vector<256x256xf32>,
    return
  }
}

</mosaic_0001>

<bundles_post_ra>
// kernel: tpu_custom_call.1
= control target key start
LH: loop header
LB: loop body
LE: loop exit
PB: predicated region body
PF: predicated region fallthrough
CT: control target
= control target key end

     0   :  { %vm52_vm0 = vcmask 261120   ;;  %s763_s0 = inlined_call_operand.vmem [shape: f32[256,32], index: 0, kind: input, shape index: {}]   ;;  %s764_s1 = inlined_call_operand.vmem [shape: f32[32,256], index: 1, kind: input, shape index: {}]   ;;  %s765_s2 = inlined_call_operand.hbm [shape: f32[256,256], index: 2, kind: output, shape index: {}]  }
   0x1   :  { %v50_v0 = vld [vmem:[%s764_s1 + $0x30] sm:$0xff]  ;;  %v51_v1 = vld [vmem:[%s764_s1 + $0x38] sm:$0xff]  ;;  %v48_v2 = vld [vmem:[%s764_s1 + $0x20] sm:$0xff] }
   0x2   :  { %521 = vmatpush.msra.mxu2 %v50_v0  ;;  %525 = vmatpush.msra.mxu3 %v51_v1  ;;  %v49_v3 = vld [vmem:[%s764_s1 + $0x28] sm:$0xff]  ;;  %v46_v4 = vld [vmem:[%s764_s1 + $0x10] sm:$0xff]  ;;  %v47_v5 = vld [vmem:[%s764_s1 + $0x18] sm:$0xff] }
   0x3   :  { %161 = vmatpush.msra.mxu0 %v50_v0  ;;  %274 = vmatpush.msra.mxu1 %v51_v1  ;;  %v44_v6 = vld [vmem:[%s764_s1] sm:$0xff]  ;;  %v45_v7 = vld [vmem:[%s764_s1 + $0x8] sm:$0xff] }
   0x4   :  { %522 = vmatpush.msra.mxu2 %v48_v2  ;;  %526 = vmatpush.msra.mxu3 %v49_v3  ;;  %v28_v8 = vld [vmem:[%s763_s0 + $0x80] sm:$0xff] }
   0x5   :  { %162 = vmatpush.msra.mxu0 %v48_v2  ;;  %275 = vmatpush.msra.mxu1 %v49_v3 }
   0x6   :  { %523 = vmatpush.msra.mxu2 %v46_v4  ;;  %527 = vmatpush.msra.mxu3 %v47_v5 }
   0x7   :  { %7 = vsyncpa [#allocation3], 0  ;;  %163 = vmatpush.msra.mxu0 %v46_v4  ;;  %276 = vmatpush.msra.mxu1 %v47_v5  ;;  %v12_v9 = vld [vmem:[%s763_s0] sm:$0xff]  ;;  %v29_v10 = vld [vmem:[%s763_s0 + $0x88] sm:$0xff]  ;;  %s445_s5 = sshll.u32 %s765_s2, 4  ;;  %s559_s6 = smov 256   ;;  %s446_s5 = int_to_ptr.hbm [resolvable:$true] %s445_s5 }
   0x8   :  { %524 = vmatpush.msra.mxu2 %v44_v6  ;;  %528 = vmatpush.msra.mxu3 %v45_v7  ;;  %v13_v11 = vld [vmem:[%s763_s0 + $0x8] sm:$0xff]  ;;  %v30_v12 = vld [vmem:[%s763_s0 + $0x90] sm:$0xff]  ;;  %v31_v14 = vld [vmem:[%s763_s0 + $0x98] sm:$0xff]  ;;  %s560_s7 = smov 16  }
   0x9   :  { %473 = vmatmul.msk.f32.vlgmr.msra.gmra.mxu2 %vm52_vm0, %v28_v8  ;;  %505 = vmatmul.msk.f32.vlgmr.msra.gmra.mxu3 %vm52_vm0, %v28_v8  ;;  %v14_v13 = vld [vmem:[%s763_s0 + $0x10] sm:$0xff]  ;;  %v15_v15 = vld [vmem:[%s763_s0 + $0x18] sm:$0xff]  ;;  %v32_v16 = vld [vmem:[%s763_s0 + $0xa0] sm:$0xff] }
   0xa   :  { %164 = vmatpush.msra.mxu0 %v44_v6  ;;  %277 = vmatpush.msra.mxu1 %v45_v7  ;;  %v16_v17 = vld [vmem:[%s763_s0 + $0x20] sm:$0xff]  ;;  %v33_v18 = vld [vmem:[%s763_s0 + $0xa8] sm:$0xff]  ;;  %v34_v20 = vld [vmem:[%s763_s0 + $0xb0] sm:$0xff] }
   0xb   :  { %457 = vmatmul.msk.f32.vlgmr.msra.gmra.mxu0 %vm52_vm0, %v12_v9  ;;  %489 = vmatmul.msk.f32.vlgmr.msra.gmra.mxu1 %vm52_vm0, %v12_v9  ;;  %v17_v19 = vld [vmem:[%s763_s0 + $0x28] sm:$0xff]  ;;  %v18_v21 = vld [vmem:[%s763_s0 + $0x30] sm:$0xff]  ;;  %v35_v22 = vld [vmem:[%s763_s0 + $0xb8] sm:$0xff] }
   0xc   :  { %v19_v23 = vld [vmem:[%s763_s0 + $0x38] sm:$0xff]  ;;  %v36_v24 = vld [vmem:[%s763_s0 + $0xc0] sm:$0xff]  ;;  %v37_v26 = vld [vmem:[%s763_s0 + $0xc8] sm:$0xff] }
   0xd   :  { %v20_v25 = vld [vmem:[%s763_s0 + $0x40] sm:$0xff]  ;;  %v21_v27 = vld [vmem:[%s763_s0 + $0x48] sm:$0xff]  ;;  %v38_v28 = vld [vmem:[%s763_s0 + $0xd0] sm:$0xff] }
   0xe   :  { %v22_v29 = vld [vmem:[%s763_s0 + $0x50] sm:$0xff]  ;;  %v39_v30 = vld [vmem:[%s763_s0 + $0xd8] sm:$0xff]  ;;  %v40_v32 = vld [vmem:[%s763_s0 + $0xe0] sm:$0xff] }
   0xf   :  { %v23_v31 = vld [vmem:[%s763_s0 + $0x58] sm:$0xff]  ;;  %v24_v33 = vld [vmem:[%s763_s0 + $0x60] sm:$0xff]  ;;  %v41_v34 = vld [vmem:[%s763_s0 + $0xe8] sm:$0xff] }
  0x10   :  { %v25_v35 = vld [vmem:[%s763_s0 + $0x68] sm:$0xff]  ;;  %v42_v36 = vld [vmem:[%s763_s0 + $0xf0] sm:$0xff]  ;;  %v43_v38 = vld [vmem:[%s763_s0 + $0xf8] sm:$0xff] }
  0x11   :  { %474 = vmatmul.msk.f32.gmra.mxu2 %vm52_vm0, %v29_v10  ;;  %506 = vmatmul.msk.f32.gmra.mxu3 %vm52_vm0, %v29_v10  ;;  %v26_v37 = vld [vmem:[%s763_s0 + $0x70] sm:$0xff]  ;;  %v27_v39 = vld [vmem:[%s763_s0 + $0x78] sm:$0xff]  ;;  %s558_s0 = smov [#allocation2]  }
  0x12   :  { %s443_s30 = sshll.u32 %s558_s0, 4  ;;  %s444_s30 = int_to_ptr.vmem [resolvable:$true] %s443_s30 }
  0x13   :  { %458 = vmatmul.msk.f32.gmra.mxu0 %vm52_vm0, %v13_v11  ;;  %490 = vmatmul.msk.f32.gmra.mxu1 %vm52_vm0, %v13_v11 }
  0x19   :  { %475 = vmatmul.msk.f32.gmra.mxu2 %vm52_vm0, %v30_v12  ;;  %507 = vmatmul.msk.f32.gmra.mxu3 %vm52_vm0, %v30_v12 }
  0x1b   :  { %459 = vmatmul.msk.f32.gmra.mxu0 %vm52_vm0, %v14_v13  ;;  %491 = vmatmul.msk.f32.gmra.mxu1 %vm52_vm0, %v14_v13 }
  0x21   :  { %476 = vmatmul.msk.f32.gmra.mxu2 %vm52_vm0, %v31_v14  ;;  %508 = vmatmul.msk.f32.gmra.mxu3 %vm52_vm0, %v31_v14 }
  0x23   :  { %460 = vmatmul.msk.f32.gmra.mxu0 %vm52_vm0, %v15_v15  ;;  %492 = vmatmul.msk.f32.gmra.mxu1 %vm52_vm0, %v15_v15 }
  0x29   :  { %477 = vmatmul.msk.f32.gmra.mxu2 %vm52_vm0, %v32_v16  ;;  %509 = vmatmul.msk.f32.gmra.mxu3 %vm52_vm0, %v32_v16 }
  0x2b   :  { %461 = vmatmul.msk.f32.gmra.mxu0 %vm52_vm0, %v16_v17  ;;  %493 = vmatmul.msk.f32.gmra.mxu1 %vm52_vm0, %v16_v17 }
  0x31   :  { %478 = vmatmul.msk.f32.gmra.mxu2 %vm52_vm0, %v33_v18  ;;  %510 = vmatmul.msk.f32.gmra.mxu3 %vm52_vm0, %v33_v18 }
  0x33   :  { %462 = vmatmul.msk.f32.gmra.mxu0 %vm52_vm0, %v17_v19  ;;  %494 = vmatmul.msk.f32.gmra.mxu1 %vm52_vm0, %v17_v19 }
  0x39   :  { %479 = vmatmul.msk.f32.gmra.mxu2 %vm52_vm0, %v34_v20  ;;  %511 = vmatmul.msk.f32.gmra.mxu3 %vm52_vm0, %v34_v20 }
  0x3b   :  { %463 = vmatmul.msk.f32.gmra.mxu0 %vm52_vm0, %v18_v21  ;;  %495 = vmatmul.msk.f32.gmra.mxu1 %vm52_vm0, %v18_v21 }
  0x41   :  { %480 = vmatmul.msk.f32.gmra.mxu2 %vm52_vm0, %v35_v22  ;;  %512 = vmatmul.msk.f32.gmra.mxu3 %vm52_vm0, %v35_v22 }
  0x43   :  { %464 = vmatmul.msk.f32.gmra.mxu0 %vm52_vm0, %v19_v23  ;;  %496 = vmatmul.msk.f32.gmra.mxu1 %vm52_vm0, %v19_v23 }
  0x49   :  { %481 = vmatmul.msk.f32.gmra.mxu2 %vm52_vm0, %v36_v24  ;;  %513 = vmatmul.msk.f32.gmra.mxu3 %vm52_vm0, %v36_v24 }
  0x4b   :  { %465 = vmatmul.msk.f32.gmra.mxu0 %vm52_vm0, %v20_v25  ;;  %497 = vmatmul.msk.f32.gmra.mxu1 %vm52_vm0, %v20_v25 }
  0x51   :  { %482 = vmatmul.msk.f32.gmra.mxu2 %vm52_vm0, %v37_v26  ;;  %514 = vmatmul.msk.f32.gmra.mxu3 %vm52_vm0, %v37_v26 }
  0x53   :  { %466 = vmatmul.msk.f32.gmra.mxu0 %vm52_vm0, %v21_v27  ;;  %498 = vmatmul.msk.f32.gmra.mxu1 %vm52_vm0, %v21_v27 }
  0x59   :  { %483 = vmatmul.msk.f32.gmra.mxu2 %vm52_vm0, %v38_v28  ;;  %515 = vmatmul.msk.f32.gmra.mxu3 %vm52_vm0, %v38_v28 }
  0x5b   :  { %467 = vmatmul.msk.f32.gmra.mxu0 %vm52_vm0, %v22_v29  ;;  %499 = vmatmul.msk.f32.gmra.mxu1 %vm52_vm0, %v22_v29 }
  0x61   :  { %484 = vmatmul.msk.f32.gmra.mxu2 %vm52_vm0, %v39_v30  ;;  %516 = vmatmul.msk.f32.gmra.mxu3 %vm52_vm0, %v39_v30 }
  0x63   :  { %468 = vmatmul.msk.f32.gmra.mxu0 %vm52_vm0, %v23_v31  ;;  %500 = vmatmul.msk.f32.gmra.mxu1 %vm52_vm0, %v23_v31 }
  0x69   :  { %485 = vmatmul.msk.f32.gmra.mxu2 %vm52_vm0, %v40_v32  ;;  %517 = vmatmul.msk.f32.gmra.mxu3 %vm52_vm0, %v40_v32 }
  0x6b   :  { %469 = vmatmul.msk.f32.gmra.mxu0 %vm52_vm0, %v24_v33  ;;  %501 = vmatmul.msk.f32.gmra.mxu1 %vm52_vm0, %v24_v33 }
  0x71   :  { %486 = vmatmul.msk.f32.gmra.mxu2 %vm52_vm0, %v41_v34  ;;  %518 = vmatmul.msk.f32.gmra.mxu3 %vm52_vm0, %v41_v34 }
  0x73   :  { %470 = vmatmul.msk.f32.gmra.mxu0 %vm52_vm0, %v25_v35  ;;  %502 = vmatmul.msk.f32.gmra.mxu1 %vm52_vm0, %v25_v35 }
  0x79   :  { %487 = vmatmul.msk.f32.gmra.mxu2 %vm52_vm0, %v42_v36  ;;  %519 = vmatmul.msk.f32.gmra.mxu3 %vm52_vm0, %v42_v36 }
  0x7b   :  { %471 = vmatmul.msk.f32.gmra.mxu0 %vm52_vm0, %v26_v37  ;;  %503 = vmatmul.msk.f32.gmra.mxu1 %vm52_vm0, %v26_v37 }
  0x81   :  { %488 = vmatmul.msk.f32.gmra.mxu2 %vm52_vm0, %v43_v38  ;;  %520 = vmatmul.msk.f32.gmra.mxu3 %vm52_vm0, %v43_v38 }
  0x83   :  { %472 = vmatmul.msk.f32.gmra.mxu0 %vm52_vm0, %v27_v39  ;;  %504 = vmatmul.msk.f32.gmra.mxu1 %vm52_vm0, %v27_v39 }
  0x88   :  { %v166_v40 = vpop.f32.mrf.mxu0  ;;  %v279_v41 = vpop.f32.mrf.mxu1 }
  0x89   :  { %375 = vst [vmem:[#allocation2] sm:$0xff] %v166_v40 }
  0x8a   :  { %376 = vst [vmem:[#allocation2 + $0x8] sm:$0xff] %v279_v41 }
  0x8c   :  { %v214_v42 = vpop.f32.mrf.mxu2  ;;  %v327_v43 = vpop.f32.mrf.mxu3 }
  0x8d   :  { %407 = vst [vmem:[#allocation2 + $0x100] sm:$0xff] %v214_v42 }
  0x8e   :  { %408 = vst [vmem:[#allocation2 + $0x108] sm:$0xff] %v327_v43 }
  0x90   :  { %v169_v44 = vpop.f32.mrf.mxu0  ;;  %v282_v45 = vpop.f32.mrf.mxu1 }
  0x91   :  { %377 = vst [vmem:[#allocation2 + $0x10] sm:$0xff] %v169_v44 }
  0x92   :  { %378 = vst [vmem:[#allocation2 + $0x18] sm:$0xff] %v282_v45 }
  0x94   :  { %v217_v46 = vpop.f32.mrf.mxu2  ;;  %v330_v47 = vpop.f32.mrf.mxu3 }
  0x95   :  { %409 = vst [vmem:[#allocation2 + $0x110] sm:$0xff] %v217_v46 }
  0x96   :  { %410 = vst [vmem:[#allocation2 + $0x118] sm:$0xff] %v330_v47 }
  0x98   :  { %v172_v48 = vpop.f32.mrf.mxu0  ;;  %v285_v49 = vpop.f32.mrf.mxu1 }
  0x99   :  { %379 = vst [vmem:[#allocation2 + $0x20] sm:$0xff] %v172_v48 }
  0x9a   :  { %380 = vst [vmem:[#allocation2 + $0x28] sm:$0xff] %v285_v49 }
  0x9c   :  { %v220_v50 = vpop.f32.mrf.mxu2  ;;  %v333_v51 = vpop.f32.mrf.mxu3 }
  0x9d   :  { %411 = vst [vmem:[#allocation2 + $0x120] sm:$0xff] %v220_v50 }
  0x9e   :  { %412 = vst [vmem:[#allocation2 + $0x128] sm:$0xff] %v333_v51 }
  0xa0   :  { %v175_v52 = vpop.f32.mrf.mxu0  ;;  %v288_v53 = vpop.f32.mrf.mxu1 }
  0xa1   :  { %381 = vst [vmem:[#allocation2 + $0x30] sm:$0xff] %v175_v52 }
  0xa2   :  { %382 = vst [vmem:[#allocation2 + $0x38] sm:$0xff] %v288_v53 }
  0xa4   :  { %v223_v54 = vpop.f32.mrf.mxu2  ;;  %v336_v55 = vpop.f32.mrf.mxu3 }
  0xa5   :  { %413 = vst [vmem:[#allocation2 + $0x130] sm:$0xff] %v223_v54 }
  0xa6   :  { %414 = vst [vmem:[#allocation2 + $0x138] sm:$0xff] %v336_v55 }
  0xa8   :  { %v178_v56 = vpop.f32.mrf.mxu0  ;;  %v291_v57 = vpop.f32.mrf.mxu1 }
  0xa9   :  { %383 = vst [vmem:[#allocation2 + $0x40] sm:$0xff] %v178_v56 }
  0xaa   :  { %384 = vst [vmem:[#allocation2 + $0x48] sm:$0xff] %v291_v57 }
  0xac   :  { %v226_v58 = vpop.f32.mrf.mxu2  ;;  %v339_v59 = vpop.f32.mrf.mxu3 }
  0xad   :  { %415 = vst [vmem:[#allocation2 + $0x140] sm:$0xff] %v226_v58 }
  0xae   :  { %416 = vst [vmem:[#allocation2 + $0x148] sm:$0xff] %v339_v59 }
  0xb0   :  { %v181_v60 = vpop.f32.mrf.mxu0  ;;  %v294_v61 = vpop.f32.mrf.mxu1 }
  0xb1   :  { %385 = vst [vmem:[#allocation2 + $0x50] sm:$0xff] %v181_v60 }
  0xb2   :  { %386 = vst [vmem:[#allocation2 + $0x58] sm:$0xff] %v294_v61 }
  0xb4   :  { %v229_v62 = vpop.f32.mrf.mxu2  ;;  %v342_v63 = vpop.f32.mrf.mxu3 }
  0xb5   :  { %417 = vst [vmem:[#allocation2 + $0x150] sm:$0xff] %v229_v62 }
  0xb6   :  { %418 = vst [vmem:[#allocation2 + $0x158] sm:$0xff] %v342_v63 }
  0xb8   :  { %v184_v0 = vpop.f32.mrf.mxu0  ;;  %v297_v1 = vpop.f32.mrf.mxu1 }
  0xb9   :  { %387 = vst [vmem:[#allocation2 + $0x60] sm:$0xff] %v184_v0 }
  0xba   :  { %388 = vst [vmem:[#allocation2 + $0x68] sm:$0xff] %v297_v1 }
  0xbc   :  { %v232_v2 = vpop.f32.mrf.mxu2  ;;  %v345_v3 = vpop.f32.mrf.mxu3 }
  0xbd   :  { %419 = vst [vmem:[#allocation2 + $0x160] sm:$0xff] %v232_v2 }
  0xbe   :  { %420 = vst [vmem:[#allocation2 + $0x168] sm:$0xff] %v345_v3 }
  0xc0   :  { %v187_v4 = vpop.f32.mrf.mxu0  ;;  %v300_v5 = vpop.f32.mrf.mxu1 }
  0xc1   :  { %389 = vst [vmem:[#allocation2 + $0x70] sm:$0xff] %v187_v4 }
  0xc2   :  { %390 = vst [vmem:[#allocation2 + $0x78] sm:$0xff] %v300_v5 }
  0xc4   :  { %v235_v6 = vpop.f32.mrf.mxu2  ;;  %v348_v7 = vpop.f32.mrf.mxu3 }
  0xc5   :  { %421 = vst [vmem:[#allocation2 + $0x170] sm:$0xff] %v235_v6 }
  0xc6   :  { %422 = vst [vmem:[#allocation2 + $0x178] sm:$0xff] %v348_v7 }
  0xc8   :  { %v190_v8 = vpop.f32.mrf.mxu0  ;;  %v303_v9 = vpop.f32.mrf.mxu1 }
  0xc9   :  { %391 = vst [vmem:[#allocation2 + $0x80] sm:$0xff] %v190_v8 }
  0xca   :  { %392 = vst [vmem:[#allocation2 + $0x88] sm:$0xff] %v303_v9 }
  0xcc   :  { %v238_v10 = vpop.f32.mrf.mxu2  ;;  %v351_v11 = vpop.f32.mrf.mxu3 }
  0xcd   :  { %423 = vst [vmem:[#allocation2 + $0x180] sm:$0xff] %v238_v10 }
  0xce   :  { %424 = vst [vmem:[#allocation2 + $0x188] sm:$0xff] %v351_v11 }
  0xd0   :  { %v193_v12 = vpop.f32.mrf.mxu0  ;;  %v306_v13 = vpop.f32.mrf.mxu1 }
  0xd1   :  { %393 = vst [vmem:[#allocation2 + $0x90] sm:$0xff] %v193_v12 }
  0xd2   :  { %394 = vst [vmem:[#allocation2 + $0x98] sm:$0xff] %v306_v13 }
  0xd4   :  { %v241_v14 = vpop.f32.mrf.mxu2  ;;  %v354_v15 = vpop.f32.mrf.mxu3 }
  0xd5   :  { %425 = vst [vmem:[#allocation2 + $0x190] sm:$0xff] %v241_v14 }
  0xd6   :  { %426 = vst [vmem:[#allocation2 + $0x198] sm:$0xff] %v354_v15 }
  0xd8   :  { %v196_v16 = vpop.f32.mrf.mxu0  ;;  %v309_v17 = vpop.f32.mrf.mxu1 }
  0xd9   :  { %395 = vst [vmem:[#allocation2 + $0xa0] sm:$0xff] %v196_v16 }
  0xda   :  { %396 = vst [vmem:[#allocation2 + $0xa8] sm:$0xff] %v309_v17 }
  0xdc   :  { %v244_v18 = vpop.f32.mrf.mxu2  ;;  %v357_v19 = vpop.f32.mrf.mxu3 }
  0xdd   :  { %427 = vst [vmem:[#allocation2 + $0x1a0] sm:$0xff] %v244_v18 }
  0xde   :  { %428 = vst [vmem:[#allocation2 + $0x1a8] sm:$0xff] %v357_v19 }
  0xe0   :  { %v199_v20 = vpop.f32.mrf.mxu0  ;;  %v312_v21 = vpop.f32.mrf.mxu1 }
  0xe1   :  { %397 = vst [vmem:[#allocation2 + $0xb0] sm:$0xff] %v199_v20 }
  0xe2   :  { %398 = vst [vmem:[#allocation2 + $0xb8] sm:$0xff] %v312_v21 }
  0xe4   :  { %v247_v22 = vpop.f32.mrf.mxu2  ;;  %v360_v23 = vpop.f32.mrf.mxu3 }
  0xe5   :  { %429 = vst [vmem:[#allocation2 + $0x1b0] sm:$0xff] %v247_v22 }
  0xe6   :  { %430 = vst [vmem:[#allocation2 + $0x1b8] sm:$0xff] %v360_v23 }
  0xe8   :  { %v202_v24 = vpop.f32.mrf.mxu0  ;;  %v315_v25 = vpop.f32.mrf.mxu1 }
  0xe9   :  { %399 = vst [vmem:[#allocation2 + $0xc0] sm:$0xff] %v202_v24 }
  0xea   :  { %400 = vst [vmem:[#allocation2 + $0xc8] sm:$0xff] %v315_v25 }
  0xec   :  { %v250_v26 = vpop.f32.mrf.mxu2  ;;  %v363_v27 = vpop.f32.mrf.mxu3 }
  0xed   :  { %431 = vst [vmem:[#allocation2 + $0x1c0] sm:$0xff] %v250_v26 }
  0xee   :  { %432 = vst [vmem:[#allocation2 + $0x1c8] sm:$0xff] %v363_v27 }
  0xf0   :  { %v205_v28 = vpop.f32.mrf.mxu0  ;;  %v318_v29 = vpop.f32.mrf.mxu1 }
  0xf1   :  { %401 = vst [vmem:[#allocation2 + $0xd0] sm:$0xff] %v205_v28 }
  0xf2   :  { %402 = vst [vmem:[#allocation2 + $0xd8] sm:$0xff] %v318_v29 }
  0xf4   :  { %v253_v30 = vpop.f32.mrf.mxu2  ;;  %v366_v31 = vpop.f32.mrf.mxu3 }
  0xf5   :  { %433 = vst [vmem:[#allocation2 + $0x1d0] sm:$0xff] %v253_v30 }
  0xf6   :  { %434 = vst [vmem:[#allocation2 + $0x1d8] sm:$0xff] %v366_v31 }
  0xf8   :  { %v208_v32 = vpop.f32.mrf.mxu0  ;;  %v321_v33 = vpop.f32.mrf.mxu1 }
  0xf9   :  { %403 = vst [vmem:[#allocation2 + $0xe0] sm:$0xff] %v208_v32 }
  0xfa   :  { %404 = vst [vmem:[#allocation2 + $0xe8] sm:$0xff] %v321_v33 }
  0xfc   :  { %v256_v34 = vpop.f32.mrf.mxu2  ;;  %v369_v35 = vpop.f32.mrf.mxu3 }
  0xfd   :  { %435 = vst [vmem:[#allocation2 + $0x1e0] sm:$0xff] %v256_v34 }
  0xfe   :  { %436 = vst [vmem:[#allocation2 + $0x1e8] sm:$0xff] %v369_v35 }
 0x100   :  { %v211_v36 = vpop.f32.mrf.mxu0  ;;  %v324_v37 = vpop.f32.mrf.mxu1 }
 0x101   :  { %405 = vst [vmem:[#allocation2 + $0xf0] sm:$0xff] %v211_v36 }
 0x102   :  { %406 = vst [vmem:[#allocation2 + $0xf8] sm:$0xff] %v324_v37 }
 0x104   :  { %v259_v38 = vpop.f32.mrf.mxu2  ;;  %v372_v39 = vpop.f32.mrf.mxu3 }
 0x105   :  { %437 = vst [vmem:[#allocation2 + $0x1f0] sm:$0xff] %v259_v38 }
 0x106   :  { %438 = vst [vmem:[#allocation2 + $0x1f8] sm:$0xff] %v372_v39 }
 0x107   :  { %451 = dma.vmem_to_hbm [thread:$0]  %s444_s30, 8192, %s446_s5, [#allocation3], %s559_s6, %s559_s6, %s560_s7  }
 0x108   :  { %556 = dma.done.wait [#allocation3], 8192  }
 0x109   :  { %557 = vsyncadd [#allocation3], 4294959104 }
 0x10a   :  { %456 = vsyncpa [#allocation3], 1 }

</bundles_post_ra>
